<compile_context>
chip_gen: v7x
topology: tpu7x:2x2x1
jax: 0.10.0
libtpu: 0.0.40
codegen_flags: <defaults>
</compile_context>

<pallas_src>
import functools
import math

import jax
import jax.numpy as jnp
from jax.experimental import pallas as pl
from jax.experimental.pallas import tpu as pltpu

EPS = 1e-5


def _cdiv(a, b):
    return -(-a // b)


def _round_up(a, b):
    return _cdiv(a, b) * b


def _round_down(a, b):
    return (a // b) * b


@functools.lru_cache(maxsize=1)
def _hw_params():
    """Returns (target_input_block_bytes, vmem_limit_cap_bytes)."""
    vmem_physical = 128 << 20  # v2–v6 class: 128 MiB VMEM per core
    try:
        info = pltpu.get_tpu_info()
        v = int(getattr(info, "vmem_capacity_bytes", 0) or 0)
        if v > 0:
            vmem_physical = v
    except Exception:
        pass
    if vmem_physical <= (64 << 20):
        # v7x-class: 64 MiB VMEM/TC but ~3.2 TB/s HBM per TC -> bigger blocks
        # (4–8 MiB) push the per-step pipeline overhead back under ~10%.
        return 6 << 20, 48 << 20
    # v5e/v6e-class: 2 MiB blocks already sit at ~85% of the HBM roofline.
    return 2 << 20, 96 << 20


def _ln_kernel(*refs, fold, has_bias):
    if fold > 1:
        if has_bias:
            x_ref, w_ref, b_ref, e_ref, et_ref, o_ref = refs
        else:
            x_ref, w_ref, e_ref, et_ref, o_ref = refs
            b_ref = None
    else:
        if has_bias:
            x_ref, w_ref, b_ref, o_ref = refs
        else:
            x_ref, w_ref, o_ref = refs
            b_ref = None
        e_ref = et_ref = None

    x = x_ref[...].astype(jnp.float32)                    # (R, Dp)

    if fold == 1:
        mean = jnp.mean(x, axis=-1, keepdims=True)
        xc = x - mean
        var = jnp.mean(xc * xc, axis=-1, keepdims=True)   # biased variance (PyTorch)
        y = xc * jax.lax.rsqrt(var + EPS)
    else:
        # Lane-dense small/odd-D path: each block row packs `fold` logical rows
        # of D features. Segmented mean/var via constant segment matmuls on the
        # otherwise-idle MXU. HIGHEST precision: default MXU precision would
        # truncate f32 operands to bf16 and break 1e-5 parity.
        hp = jax.lax.Precision.HIGHEST
        E = e_ref[...]                                     # (Dp, fold), 1/D folded in
        ET = et_ref[...]                                   # (fold, Dp), 0/1 broadcast-back
        mean = jnp.dot(x, E, precision=hp,
                       preferred_element_type=jnp.float32)             # (R, fold)
        xc = x - jnp.dot(mean, ET, precision=hp,
                         preferred_element_type=jnp.float32)            # (R, Dp)
        var = jnp.dot(xc * xc, E, precision=hp,
                      preferred_element_type=jnp.float32)               # (R, fold)
        inv = jax.lax.rsqrt(var + EPS)
        y = xc * jnp.dot(inv, ET, precision=hp,
                         preferred_element_type=jnp.float32)

    y = y * w_ref[...]                                     # (1, Dp) f32, broadcast over rows
    if has_bias:
        y = y + b_ref[...]
    o_ref[...] = y.astype(o_ref.dtype)


def _choose_tile_rows(n_rows, row_bytes, itemsize, target_bytes, max_rows):
    """Dtype-aware sublane packing; ~target_bytes input blocks; VMEM-clamped;
    prefer an even number of grid steps >= 4 (>= 2 per v7x TensorCore)."""
    pack = 8 * max(1, 4 // itemsize)          # 8 (f32) / 16 (bf16) / 32 (int8/fp8)
    if n_rows <= pack:
        return n_rows                          # single block == full array (always legal)
    rows = max(pack, _round_down(target_bytes // max(1, row_bytes), pack))
    rows = min(rows, max(pack, _round_down(max_rows, pack)))
    if n_rows >= 4 * pack:
        # >= 4 steps so each of v7x's two TensorCores can double-buffer.
        rows = min(rows, max(pack, _round_down((n_rows - 1) // 3, pack)))
        steps = _cdiv(n_rows, rows)
        if steps % 2 == 1:
            alt = max(pack, _round_up(_cdiv(n_rows, steps + 1), pack))
            if alt <= rows and _cdiv(n_rows, alt) % 2 == 0:
                rows = alt                     # even step count, balanced cores
    else:
        # small case: at least 2 steps so the pipeline overlaps at all
        rows = min(rows, max(pack, _round_up(_cdiv(n_rows, 2), pack)))
    return min(rows, n_rows)


@functools.partial(jax.jit, static_argnames=("tile_rows",))
def layer_norm_pallas(x, weight, bias=None, *, tile_rows=None):
    """LayerNorm over the last dim of x. x: (..., D); weight/bias: (D,)."""
    orig_shape = x.shape
    D = orig_shape[-1]
    x2 = x.reshape(-1, D)
    N = x2.shape[0]
    itemsize = jnp.dtype(x.dtype).itemsize
    pack = 8 * max(1, 4 // itemsize)
    target_bytes, cap_bytes = _hw_params()
    has_bias = bias is not None

    # --- Lane-dense fold: Dp = lcm(D, 128). Any D not a multiple of 128 gets
    # folded so output stores are unmasked full-lane vst (biggest single lever).
    fold = 1
    if D % 128 != 0:
        f = 128 // math.gcd(D, 128)
        # keep the constant segment matrices small (<= ~1 MiB each)
        if (D * f) * f * 4 <= (1 << 20):
            fold = f
    Dp = D * fold

    pad_rows = (-N) % fold
    if pad_rows:
        x2 = jnp.concatenate([x2, jnp.zeros((pad_rows, D), x2.dtype)], axis=0)
    Nf = (N + pad_rows) // fold
    xf = x2.reshape(Nf, Dp)

    # --- Pre-cast / pre-tile weight & bias to f32 (no per-step re-upcast).
    w32 = weight.astype(jnp.float32).reshape(1, D)
    if fold > 1:
        w32 = jnp.tile(w32, (1, fold))
    args = [xf, w32]
    if has_bias:
        b32 = bias.astype(jnp.float32).reshape(1, D)
        if fold > 1:
            b32 = jnp.tile(b32, (1, fold))
        args.append(b32)

    # --- VMEM budget: 2x in + 2x out double buffers + ~3 live f32 block temps
    # (the in-kernel upcast), plus resident f32 vectors / segment matrices.
    consts = (2 if has_bias else 1) * Dp * 4 * 2
    if fold > 1:
        consts += 2 * (Dp * fold * 4) * 2
    fixed_bytes = consts + (2 << 20)                       # + headroom
    per_row_bytes = Dp * (4 * itemsize + 12)
    if fixed_bytes + min(Nf, pack) * per_row_bytes > cap_bytes:
        # TODO(synk): column-tiled (two-pass over D) fallback for huge D.
        raise ValueError(
            f"layer_norm_pallas: feature dim {D} (padded {Dp}) too large for a "
            f"single full-row block within {cap_bytes >> 20} MiB VMEM; "
            f"D-tiled fallback not implemented.")
    max_rows = max(1, (cap_bytes - fixed_bytes) // per_row_bytes)

    if tile_rows is None:
        tile_rows = _choose_tile_rows(Nf, Dp * itemsize, itemsize,
                                      target_bytes, max_rows)
    else:
        if tile_rows < Nf:
            tile_rows = max(pack, _round_up(tile_rows, pack))
        tile_rows = min(tile_rows, Nf)
    grid = pl.cdiv(Nf, tile_rows)

    row_spec = pl.BlockSpec((tile_rows, Dp), lambda i: (i, 0))
    vec_spec = pl.BlockSpec((1, Dp), lambda i: (0, 0))
    in_specs = [row_spec, vec_spec] + ([vec_spec] if has_bias else [])

    if fold > 1:
        # Constant segment matrices: E maps lanes -> segment mean (1/D folded
        # in), ET broadcasts per-segment scalars back to lanes. Built once in
        # the wrapper so the kernel carries no per-step iota/compare/cast work.
        seg = jnp.arange(Dp, dtype=jnp.int32) // D
        ids = jnp.arange(fold, dtype=jnp.int32)
        E = (seg[:, None] == ids[None, :]).astype(jnp.float32) * (1.0 / D)
        ET = (ids[:, None] == seg[None, :]).astype(jnp.float32)
        args += [E, ET]
        in_specs += [pl.BlockSpec((Dp, fold), lambda i: (0, 0)),
                     pl.BlockSpec((fold, Dp), lambda i: (0, 0))]

    blk = tile_rows * Dp * itemsize
    vmem_need = 4 * blk + 3 * tile_rows * Dp * 4 + fixed_bytes
    vmem_limit = int(min(cap_bytes, max(16 << 20, vmem_need)))

    kernel = functools.partial(_ln_kernel, fold=fold, has_bias=has_bias)

    out = pl.pallas_call(
        kernel,
        out_shape=jax.ShapeDtypeStruct((Nf, Dp), x.dtype),
        grid_spec=pltpu.PrefetchScalarGridSpec(
            num_scalar_prefetch=0,
            grid=(grid,),
            in_specs=in_specs,
            out_specs=row_spec,
        ),
        compiler_params=pltpu.CompilerParams(
            dimension_semantics=("parallel",),
            vmem_limit_bytes=vmem_limit,
        ),
    )(*args)

    out2 = out.reshape(Nf * fold, D)
    if pad_rows:
        out2 = out2[:N]
    return out2.reshape(orig_shape)


if __name__ == "__main__":
    key = jax.random.PRNGKey(0)
    keys = jax.random.split(key, 10)

    def ref_layernorm(x, w, b=None):
        xf = x.astype(jnp.float32)
        mean = jnp.mean(xf, axis=-1, keepdims=True)
        xc = xf - mean
        var = jnp.mean(xc * xc, axis=-1, keepdims=True)
        y = xc * jax.lax.rsqrt(var + EPS) * w
        if b is not None:
            y = y + b
        return y.astype(x.dtype)

    # Case 1: small hidden dim (D=32) -> lane-dense folded path (fold=4).
    B, T, D = 2, 8, 32
    x = jax.random.normal(keys[0], (B, T, D), dtype=jnp.float32)
    w = jnp.ones((D,), jnp.float32) + 0.1 * jax.random.normal(keys[1], (D,))
    b = 0.1 * jax.random.normal(keys[2], (D,))
    y = jax.block_until_ready(layer_norm_pallas(x, w, b))
    assert jnp.allclose(y, ref_layernorm(x, w, b), atol=1e-5, rtol=1e-5)

    # bias=False module variant (separate no-bias kernel, no zeros array).
    y_nb = jax.block_until_ready(layer_norm_pallas(x, w, None))
    assert jnp.allclose(y_nb, ref_layernorm(x, w), atol=1e-5, rtol=1e-5)

    # Case 2: D multiple of 128, row count not a multiple of the tile
    # (exercises the cdiv grid / masked partial tail block path).
    x2 = jax.random.normal(keys[3], (2, 5, 128), dtype=jnp.float32)
    w2 = jnp.ones((128,), jnp.float32) + 0.1 * jax.random.normal(keys[4], (128,))
    b2 = 0.1 * jax.random.normal(keys[5], (128,))
    y2 = jax.block_until_ready(layer_norm_pallas(x2, w2, b2))
    assert jnp.allclose(y2, ref_layernorm(x2, w2, b2), atol=1e-5, rtol=1e-5)

    # Case 3: D=96 (neither divides nor is a multiple of 128) -> generalized
    # gcd-based fold (fold=4, Dp=384) plus zero-row padding (N=10 -> 12).
    x3 = jax.random.normal(keys[6], (2, 5, 96), dtype=jnp.float32)
    w3 = jnp.ones((96,), jnp.float32) + 0.1 * jax.random.normal(keys[7], (96,))
    b3 = 0.1 * jax.random.normal(keys[8], (96,))
    y3 = jax.block_until_ready(layer_norm_pallas(x3, w3, b3))
    assert jnp.allclose(y3, ref_layernorm(x3, w3, b3), atol=1e-5, rtol=1e-5)

    # Case 4: bf16 activations (dtype-aware sublane packing, f32 accumulation).
    x4 = jax.random.normal(keys[9], (2, 8, 128), dtype=jnp.bfloat16)
    y4 = jax.block_until_ready(layer_norm_pallas(x4, w2, b2))
    assert jnp.allclose(y4.astype(jnp.float32),
                        ref_layernorm(x4, w2, b2).astype(jnp.float32),
                        atol=2e-2, rtol=2e-2)

    print("KERNEL_OK")
</pallas_src>

<mosaic_0001>
module attributes {stable_mosaic.version = 11 : i64} {
  func.func @_ln_kernel(%arg0: i32, %arg1: memref<4x128xf32, #tpu.memory_space<vmem>>, %arg2: memref<1x128xf32, #tpu.memory_space<vmem>>, %arg3: memref<1x128xf32, #tpu.memory_space<vmem>>, %arg4: memref<128x4xf32, #tpu.memory_space<vmem>>, %arg5: memref<4x128xf32, #tpu.memory_space<vmem>>, %arg6: memref<4x128xf32, #tpu.memory_space<vmem>>) attributes {dimension_semantics = [#tpu.dimension_semantics<parallel>], iteration_bounds = array<i64: 1>, scalar_prefetch = 0 : i64, scratch_operands = 0 : i64, tpu.core_type = #tpu.core_type<tc>, window_params = [{transform_indices = @transform_0, window_bounds = array<i64: 4, 128>}, {pipeline_mode = #tpu.pipeline_mode<synchronous>, transform_indices = @transform_1, window_bounds = array<i64: 1, 128>}, {pipeline_mode = #tpu.pipeline_mode<synchronous>, transform_indices = @transform_2, window_bounds = array<i64: 1, 128>}, {pipeline_mode = #tpu.pipeline_mode<synchronous>, transform_indices = @transform_3, window_bounds = array<i64: 128, 4>}, {pipeline_mode = #tpu.pipeline_mode<synchronous>, transform_indices = @transform_4, window_bounds = array<i64: 4, 128>}, {transform_indices = @transform_5, window_bounds = array<i64: 4, 128>}]} {
    %c0 = arith.constant 0 : index
    %c0_0 = arith.constant 0 : index
    %0 = vector.load %arg1[%c0, %c0_0] : memref<4x128xf32, #tpu.memory_space<vmem>>, vector<4x128xf32>
    %c0_1 = arith.constant 0 : index
    %c0_2 = arith.constant 0 : index
    %1 = vector.load %arg4[%c0_1, %c0_2] : memref<128x4xf32, #tpu.memory_space<vmem>>, vector<128x4xf32>
    %c0_3 = arith.constant 0 : index
    %c0_4 = arith.constant 0 : index
    %2 = vector.load %arg5[%c0_3, %c0_4] : memref<4x128xf32, #tpu.memory_space<vmem>>, vector<4x128xf32>
    %cst = arith.constant dense<0.000000e+00> : vector<4x4xf32>
    %3 = tpu.matmul %0, %1, %cst {dimension_numbers = #tpu.dot_dimension_numbers<[1], [0], [0], [1], [0, 0, 1, 1], [], []>, precision = #tpu.contract_precision<fp32>} : vector<4x128xf32>, vector<128x4xf32>, vector<4x4xf32> -> vector<4x4xf32>
    %cst_5 = arith.constant dense<0.000000e+00> : vector<4x128xf32>
    %4 = tpu.matmul %3, %2, %cst_5 {dimension_numbers = #tpu.dot_dimension_numbers<[1], [0], [0], [1], [0, 0, 1, 1], [], []>, precision = #tpu.contract_precision<fp32>} : vector<4x4xf32>, vector<4x128xf32>, vector<4x128xf32> -> vector<4x128xf32>
    %5 = arith.subf %0, %4 : vector<4x128xf32>
    %6 = arith.mulf %5, %5 : vector<4x128xf32>
    %cst_6 = arith.constant dense<0.000000e+00> : vector<4x4xf32>
    %7 = tpu.matmul %6, %1, %cst_6 {dimension_numbers = #tpu.dot_dimension_numbers<[1], [0], [0], [1], [0, 0, 1, 1], [], []>, precision = #tpu.contract_precision<fp32>} : vector<4x128xf32>, vector<128x4xf32>, vector<4x4xf32> -> vector<4x4xf32>
    %cst_7 = arith.constant 9.99999974E-6 : f32
    %8 = vector.broadcast %cst_7 : f32 to vector<4x4xf32>
    %9 = arith.addf %7, %8 : vector<4x4xf32>
    %10 = math.rsqrt %9 : vector<4x4xf32>
    %cst_8 = arith.constant dense<0.000000e+00> : vector<4x128xf32>
    %11 = tpu.matmul %10, %2, %cst_8 {dimension_numbers = #tpu.dot_dimension_numbers<[1], [0], [0], [1], [0, 0, 1, 1], [], []>, precision = #tpu.contract_precision<fp32>} : vector<4x4xf32>, vector<4x128xf32>, vector<4x128xf32> -> vector<4x128xf32>
    %12 = arith.mulf %5, %11 : vector<4x128xf32>
    %c0_9 = arith.constant 0 : index
    %c0_10 = arith.constant 0 : index
    %13 = vector.load %arg2[%c0_9, %c0_10] : memref<1x128xf32, #tpu.memory_space<vmem>>, vector<1x128xf32>
    %14 = vector.broadcast %13 : vector<1x128xf32> to vector<4x128xf32>
    %15 = arith.mulf %12, %14 : vector<4x128xf32>
    %c0_11 = arith.constant 0 : index
    %c0_12 = arith.constant 0 : index
    %16 = vector.load %arg3[%c0_11, %c0_12] : memref<1x128xf32, #tpu.memory_space<vmem>>, vector<1x128xf32>
    %17 = vector.broadcast %16 : vector<1x128xf32> to vector<4x128xf32>
    %18 = arith.addf %15, %17 : vector<4x128xf32>
    %c0_13 = arith.constant 0 : index
    %c0_14 = arith.constant 0 : index
    %19 = vector.load %arg6[%c0_13, %c0_14] : memref<4x128xf32, #tpu.memory_space<vmem>>, vector<4x128xf32>
    tpu.vector_store %arg6[%c0_13, %c0_14], %18 {strides = array<i32>} : memref<4x128xf32, #tpu.memory_space<vmem>>, vector<4x128xf32>,
    return
  }
  func.func @transform_0(%arg0: i32) -> (i32, i32) {
    %c0_i32 = arith.constant 0 : i32
    %c0_i32_0 = arith.constant 0 : i32
    return %arg0, %c0_i32 : i32, i32
  }
  func.func @transform_1(%arg0: i32) -> (i32, i32) {
    %c0_i32 = arith.constant 0 : i32
    %c0_i32_0 = arith.constant 0 : i32
    %c0_i32_1 = arith.constant 0 : i32
    return %c0_i32, %c0_i32_0 : i32, i32
  }
  func.func @transform_2(%arg0: i32) -> (i32, i32) {
    %c0_i32 = arith.constant 0 : i32
    %c0_i32_0 = arith.constant 0 : i32
    %c0_i32_1 = arith.constant 0 : i32
    return %c0_i32, %c0_i32_0 : i32, i32
  }
  func.func @transform_3(%arg0: i32) -> (i32, i32) {
    %c0_i32 = arith.constant 0 : i32
    %c0_i32_0 = arith.constant 0 : i32
    %c0_i32_1 = arith.constant 0 : i32
    return %c0_i32, %c0_i32_0 : i32, i32
  }
  func.func @transform_4(%arg0: i32) -> (i32, i32) {
    %c0_i32 = arith.constant 0 : i32
    %c0_i32_0 = arith.constant 0 : i32
    %c0_i32_1 = arith.constant 0 : i32
    return %c0_i32, %c0_i32_0 : i32, i32
  }
  func.func @transform_5(%arg0: i32) -> (i32, i32) {
    %c0_i32 = arith.constant 0 : i32
    %c0_i32_0 = arith.constant 0 : i32
    return %arg0, %c0_i32 : i32, i32
  }
}

</mosaic_0001>

<bundles_post_ra>
// kernel: layer_norm_pallas.1
= control target key start
LH: loop header
LB: loop body
LE: loop exit
PB: predicated region body
PF: predicated region fallthrough
CT: control target
= control target key end

     0   :  { %v3292_v0 = vmov 0.0|0.0   ;;  %vm3293_vm0 = vmmov 0   ;;  %v3294_v4 = vmov 0.0   ;;  %vm683_vm1 = vcmask 1043456   ;;  %s3841_s3 = inlined_call_operand.vmem [shape: f32[128,4], index: 3, kind: input, shape index: {}]   ;;  %s3842_s0 = inlined_call_operand.vmem [shape: f32[4,128], index: 0, kind: input, shape index: {}]   ;;  %s3843_s4 = inlined_call_operand.vmem [shape: f32[4,128], index: 4, kind: input, shape index: {}]   ;;  %s3844_s1 = inlined_call_operand.vmem [shape: f32[1,128], index: 1, kind: input, shape index: {}]   ;;  %s3845_s2 = inlined_call_operand.vmem [shape: f32[1,128], index: 2, kind: input, shape index: {}]   ;;  %s3846_s5 = inlined_call_operand.vmem [shape: f32[4,128], index: 5, kind: output, shape index: {}]  }
   0x1   :  { %2958 = vmatprep.subr.bf16.mxu0 %v3292_v0  ;;  %v21_v1 = vld [vmem:[%s3841_s3] sm:$0xff]  ;;  %v22_v2 = vld [vmem:[%s3841_s3 + $0x8] sm:$0xff]  ;;  %v23_v3 = vld [vmem:[%s3841_s3 + $0x10] sm:$0xff]  ;;  %2510 = vmatprep.mubr.msk.f32.mxu0 %vm3293_vm0, %v3294_v4  ;;  %vm679_vm2 = vcmask 31744  }
   0x2   :  { %v39_v5 = vand.u32 4294901760, %v21_v1  ;;  %v42_v6 = vand.u32 4294901760, %v22_v2  ;;  %v24_v7 = vld [vmem:[%s3841_s3 + $0x18] sm:$0xff]  ;;  %v45_v8 = vand.u32 4294901760, %v23_v3  ;;  %2688 = vmatprep.subr.mxu1 %v3294_v4  ;;  %2690 = vmatprep.mubr.msk.f32.mxu1 %vm3293_vm0, %v3294_v4  ;;  %v25_v10 = vld [vmem:[%s3841_s3 + $0x20] sm:$0xff]  ;;  %v26_v11 = vld [vmem:[%s3841_s3 + $0x28] sm:$0xff] }
   0x3   :  { %v48_v9 = vand.u32 4294901760, %v24_v7  ;;  %v51_v14 = vand.u32 4294901760, %v25_v10  ;;  %v54_v15 = vand.u32 4294901760, %v26_v11  ;;  %v27_v16 = vld [vmem:[%s3841_s3 + $0x30] sm:$0xff]  ;;  %v28_v17 = vld [vmem:[%s3841_s3 + $0x38] sm:$0xff]  ;;  %v29_v21 = vld [vmem:[%s3841_s3 + $0x40] sm:$0xff] }
   0x4   :  { %v3349_v12 = vpack.c.bf16 %v42_v6, %v39_v5  ;;  %v57_v19 = vand.u32 4294901760, %v27_v16  ;;  %v60_v20 = vand.u32 4294901760, %v28_v17  ;;  %v3370_v22 = vld [vmem:[%s3842_s0] sm:$0xf]  ;;  %v30_v23 = vld [vmem:[%s3841_s3 + $0x48] sm:$0xff]  ;;  %v31_v24 = vld [vmem:[%s3841_s3 + $0x50] sm:$0xff]  ;;  %v3400_v34 = vsub.f32 %v21_v1, %v39_v5 }
   0x5   :  { %v3352_v13 = vpack.c.bf16 %v48_v9, %v45_v8  ;;  %v3362_v18 = vpack.c.bf16 %v54_v15, %v51_v14  ;;  %v32_v25 = vld [vmem:[%s3841_s3 + $0x58] sm:$0xff]  ;;  %v33_v26 = vld [vmem:[%s3841_s3 + $0x60] sm:$0xff]  ;;  %v63_v27 = vand.u32 4294901760, %v29_v21  ;;  %v34_v28 = vld [vmem:[%s3841_s3 + $0x68] sm:$0xff]  ;;  %v3395_v31 = vand.u32 4294901760, %v3370_v22 }
   0x6   :  { %2960 = vmatpush3.bf16.msra.mxu0 %v3349_v12  ;;  %v35_v29 = vld [vmem:[%s3841_s3 + $0x70] sm:$0xff]  ;;  %v36_v30 = vld [vmem:[%s3841_s3 + $0x78] sm:$0xff]  ;;  %v3398_v32 = vpack.c.bf16 %v60_v20, %v57_v19  ;;  %v66_v33 = vand.u32 4294901760, %v30_v23  ;;  %v3402_v35 = vsub.f32 %v22_v2, %v42_v6  ;;  %v69_v36 = vand.u32 4294901760, %v31_v24 }
   0x7   :  { %2961 = vmatprep.subr.bf16.mxu0 %v3292_v0  ;;  %v72_v37 = vand.u32 4294901760, %v32_v25  ;;  %v75_v38 = vand.u32 4294901760, %v33_v26  ;;  %v78_v39 = vand.u32 4294901760, %v34_v28  ;;  %v81_v40 = vand.u32 4294901760, %v35_v29 }
   0x8   :  { %v84_v41 = vand.u32 4294901760, %v36_v30  ;;  %v3407_v42 = vsub.f32 %v3370_v22, %v3395_v31  ;;  %v3409_v43 = vsub.f32 %v23_v3, %v45_v8  ;;  %v3411_v44 = vsub.f32 %v24_v7, %v48_v9 }
   0x9   :  { %v3414_v45 = vpack.c.bf16 %v66_v33, %v63_v27  ;;  %v132_v46 = vand.u32 4294901760, %v3400_v34  ;;  %v139_v47 = vand.u32 4294901760, %v3402_v35  ;;  %v3418_v48 = vsub.f32 %v25_v10, %v51_v14 }
   0xa   :  { %2963 = vmatpush3.bf16.msra.mxu0 %v3352_v13  ;;  %v3421_v49 = vpack.c.bf16 %v72_v37, %v69_v36  ;;  %v3423_v50 = vpack.c.bf16 %v78_v39, %v75_v38  ;;  %v3425_v51 = vpack.c.bf16 %v84_v41, %v81_v40  ;;  %v121_v52 = vand.u32 4294901760, %v3407_v42 }
   0xb   :  { %2964 = vmatprep.subr.bf16.mxu0 %v3292_v0  ;;  %v146_v53 = vand.u32 4294901760, %v3409_v43  ;;  %v153_v54 = vand.u32 4294901760, %v3411_v44  ;;  %v3430_v55 = vsub.f32 %v26_v11, %v54_v15  ;;  %v133_v56 = vsub.f32 %v3400_v34, %v132_v46 }
   0xc   :  { %v140_v57 = vsub.f32 %v3402_v35, %v139_v47  ;;  %v160_v58 = vand.u32 4294901760, %v3418_v48  ;;  %v3436_v59 = vsub.f32 %v27_v16, %v57_v19  ;;  %v3439_v60 = vsub.f32 %v28_v17, %v60_v20 }
   0xd   :  { %v3441_v61 = vsub.f32 %v29_v21, %v63_v27  ;;  %v3443_v62 = vsub.f32 %v30_v23, %v66_v33  ;;  %v3445_v63 = vsub.f32 %v31_v24, %v69_v36  ;;  %v3447_v1 = vsub.f32 %v32_v25, %v72_v37 }
   0xe   :  { %2966 = vmatpush3.bf16.msra.mxu0 %v3362_v18  ;;  %v3449_v2 = vsub.f32 %v33_v26, %v75_v38  ;;  %v3451_v3 = vsub.f32 %v34_v28, %v78_v39  ;;  %v3453_v5 = vsub.f32 %v35_v29, %v81_v40  ;;  %v122_v6 = vsub.f32 %v3407_v42, %v121_v52 }
   0xf   :  { %2967 = vmatprep.subr.bf16.mxu0 %v3292_v0  ;;  %v147_v7 = vsub.f32 %v3409_v43, %v146_v53  ;;  %v167_v8 = vand.u32 4294901760, %v3430_v55  ;;  %v3460_v9 = vsub.f32 %v36_v30, %v84_v41  ;;  %v134_v10 = vand.u32 4294901760, %v133_v56 }
  0x10   :  { %v141_v11 = vand.u32 4294901760, %v140_v57  ;;  %v154_v14 = vsub.f32 %v3411_v44, %v153_v54  ;;  %v174_v15 = vand.u32 4294901760, %v3436_v59  ;;  %v181_v16 = vand.u32 4294901760, %v3439_v60 }
  0x11   :  { %v188_v17 = vand.u32 4294901760, %v3441_v61  ;;  %v195_v19 = vand.u32 4294901760, %v3443_v62  ;;  %v202_v20 = vand.u32 4294901760, %v3445_v63  ;;  %v209_v21 = vand.u32 4294901760, %v3447_v1 }
  0x12   :  { %2969 = vmatpush3.bf16.msra.mxu0 %v3398_v32  ;;  %v216_v23 = vand.u32 4294901760, %v3449_v2  ;;  %v223_v24 = vand.u32 4294901760, %v3451_v3  ;;  %v230_v25 = vand.u32 4294901760, %v3453_v5  ;;  %v237_v26 = vand.u32 4294901760, %v3460_v9 }
  0x13   :  { %2970 = vmatprep.subr.bf16.mxu0 %v3292_v0  ;;  %v3475_v27 = vpack.c.bf16 %v139_v47, %v132_v46  ;;  %v3477_v28 = vpack.c.bf16 %v153_v54, %v146_v53  ;;  %v3479_v29 = vpack.c.bf16 %v167_v8, %v160_v58  ;;  %v3482_v30 = vpack.c.bf16 %v181_v16, %v174_v15 }
  0x14   :  { %v3484_v33 = vpack.c.bf16 %v195_v19, %v188_v17  ;;  %v3486_v36 = vpack.c.bf16 %v209_v21, %v202_v20  ;;  %v3488_v37 = vpack.c.bf16 %v223_v24, %v216_v23  ;;  %v3491_v38 = vpack.c.bf16 %v237_v26, %v230_v25 }
  0x15   :  { %v123_v39 = vand.u32 4294901760, %v122_v6  ;;  %v161_v40 = vsub.f32 %v3418_v48, %v160_v58  ;;  %v3495_v41 = vpack.c.bf16 %v141_v11, %v134_v10  ;;  %v148_v46 = vand.u32 4294901760, %v147_v7 }
  0x16   :  { %2972 = vmatpush3.bf16.msra.mxu0 %v3414_v45  ;;  %v155_v47 = vand.u32 4294901760, %v154_v14  ;;  %v168_v53 = vsub.f32 %v3430_v55, %v167_v8  ;;  %v175_v54 = vsub.f32 %v3436_v59, %v174_v15  ;;  %v182_v58 = vsub.f32 %v3439_v60, %v181_v16 }
  0x17   :  { %2973 = vmatprep.subr.bf16.mxu0 %v3292_v0  ;;  %v162_v57 = vand.u32 4294901760, %v161_v40  ;;  %v189_v11 = vsub.f32 %v3441_v61, %v188_v17  ;;  %v196_v14 = vsub.f32 %v3443_v62, %v195_v19  ;;  %v203_v15 = vsub.f32 %v3445_v63, %v202_v20 }
  0x18   :  { %v3501_v56 = vpack.c.bf16 %v155_v47, %v148_v46  ;;  %v169_v6 = vand.u32 4294901760, %v168_v53  ;;  %v176_v7 = vand.u32 4294901760, %v175_v54  ;;  %v183_v10 = vand.u32 4294901760, %v182_v58 }
  0x19   :  { %v197_v40 = vand.u32 4294901760, %v196_v14  ;;  %v210_v46 = vsub.f32 %v3447_v1, %v209_v21  ;;  %v217_v47 = vsub.f32 %v3449_v2, %v216_v23  ;;  %v204_v19 = vand.u32 4294901760, %v203_v15 }
  0x1a   :  { %2975 = vmatpush3.bf16.msra.mxu0 %v3421_v49  ;;  %v3508_v8 = vpack.c.bf16 %v169_v6, %v162_v57  ;;  %v3515_v16 = vpack.c.bf16 %v183_v10, %v176_v7  ;;  %v224_v20 = vsub.f32 %v3451_v3, %v223_v24  ;;  %v231_v54 = vsub.f32 %v3453_v5, %v230_v25 }
  0x1b   :  { %2976 = vmatprep.subr.bf16.mxu0 %v3292_v0  ;;  %v211_v53 = vand.u32 4294901760, %v210_v46  ;;  %v218_v21 = vand.u32 4294901760, %v217_v47  ;;  %v238_v23 = vsub.f32 %v3460_v9, %v237_v26  ;;  %v3542_v26 = vpack.c.bf16 %v3402_v35, %v3400_v34 }
  0x1c   :  { %v225_v6 = vand.u32 4294901760, %v224_v20  ;;  %v232_v7 = vand.u32 4294901760, %v231_v54  ;;  %v3549_v10 = vpack.c.bf16 %v3411_v44, %v3409_v43  ;;  %v3557_v34 = vpack.c.bf16 %v3430_v55, %v3418_v48 }
  0x1d   :  { %v3527_v57 = vpack.c.bf16 %v211_v53, %v204_v19  ;;  %v239_v24 = vand.u32 4294901760, %v238_v23  ;;  %v3563_v35 = vpack.c.bf16 %v3439_v60, %v3436_v59  ;;  %v3569_v43 = vpack.c.bf16 %v3443_v62, %v3441_v61 }
  0x1e   :  { %2978 = vmatpush3.bf16.msra.mxu0 %v3423_v50  ;;  %v3532_v58 = vpack.c.bf16 %v225_v6, %v218_v21  ;;  %v3575_v44 = vpack.c.bf16 %v3447_v1, %v3445_v63  ;;  %v3581_v48 = vpack.c.bf16 %v3451_v3, %v3449_v2  ;;  %v3587_v55 = vpack.c.bf16 %v3460_v9, %v3453_v5 }
  0x1f   :  { %2979 = vmatprep.subr.bf16.mxu0 %v3292_v0  ;;  %v3536_v25 = vpack.c.bf16 %v239_v24, %v232_v7 }
  0x22   :  { %2981 = vmatpush3.bf16.msra.mxu0 %v3425_v51 }
  0x23   :  { %2982 = vmatprep.subr.bf16.mxu0 %v3292_v0 }
  0x25   :  { %2511 = vmatmul.mubr.f32.vlgmr.msra.gmra.mrb[0].mxu0 %v123_v39  ;;  %v190_v39 = vand.u32 4294901760, %v189_v11 }
  0x26   :  { %2984 = vmatpush3.bf16.msra.mxu0 %v3495_v41  ;;  %2545 = vmatprep.mubr.msk.f32.mxu0 %vm3293_vm0, %v3294_v4 }
  0x27   :  { %2985 = vmatprep.subr.bf16.mxu0 %v3292_v0  ;;  %v3521_v17 = vpack.c.bf16 %v197_v40, %v190_v39 }
  0x2a   :  { %2987 = vmatpush3.bf16.msra.mxu0 %v3501_v56 }
  0x2b   :  { %2988 = vmatprep.subr.bf16.mxu0 %v3292_v0 }
  0x2e   :  { %2990 = vmatpush3.bf16.msra.mxu0 %v3508_v8 }
  0x2f   :  { %2991 = vmatprep.subr.bf16.mxu0 %v3292_v0 }
  0x32   :  { %2993 = vmatpush3.bf16.msra.mxu0 %v3515_v16 }
  0x33   :  { %2994 = vmatprep.subr.bf16.mxu0 %v3292_v0 }
  0x36   :  { %2996 = vmatpush3.bf16.msra.mxu0 %v3521_v17 }
  0x37   :  { %2997 = vmatprep.subr.bf16.mxu0 %v3292_v0 }
  0x3a   :  { %2999 = vmatpush3.bf16.msra.mxu0 %v3527_v57 }
  0x3b   :  { %3000 = vmatprep.subr.bf16.mxu0 %v3292_v0 }
  0x3e   :  { %3002 = vmatpush3.bf16.msra.mxu0 %v3532_v58 }
  0x3f   :  { %3003 = vmatprep.subr.bf16.mxu0 %v3292_v0 }
  0x42   :  { %3005 = vmatpush3.bf16.msra.mxu0 %v3536_v25 }
  0x43   :  { %3006 = vmatprep.subr.bf16.mxu0 %v3292_v0 }
  0x45   :  { %2546 = vmatmul.mubr.f32.vlgmr.msra.gmra.mrb[0].mxu0 %v3395_v31 }
  0x46   :  { %3008 = vmatpush3.bf16.msra.mxu0 %v3542_v26  ;;  %2580 = vmatprep.mubr.msk.f32.mxu0 %vm3293_vm0, %v3294_v4 }
  0x47   :  { %3009 = vmatprep.subr.bf16.mxu0 %v3292_v0 }
  0x4a   :  { %3011 = vmatpush3.bf16.msra.mxu0 %v3549_v10 }
  0x4b   :  { %3012 = vmatprep.subr.bf16.mxu0 %v3292_v0 }
  0x4e   :  { %3014 = vmatpush3.bf16.msra.mxu0 %v3557_v34 }
  0x4f   :  { %3015 = vmatprep.subr.bf16.mxu0 %v3292_v0 }
  0x52   :  { %3017 = vmatpush3.bf16.msra.mxu0 %v3563_v35 }
  0x53   :  { %3018 = vmatprep.subr.bf16.mxu0 %v3292_v0 }
  0x56   :  { %3020 = vmatpush3.bf16.msra.mxu0 %v3569_v43 }
  0x57   :  { %3021 = vmatprep.subr.bf16.mxu0 %v3292_v0 }
  0x5a   :  { %3023 = vmatpush3.bf16.msra.mxu0 %v3575_v44 }
  0x5b   :  { %3024 = vmatprep.subr.bf16.mxu0 %v3292_v0 }
  0x5e   :  { %3026 = vmatpush3.bf16.msra.mxu0 %v3581_v48 }
  0x5f   :  { %3027 = vmatprep.subr.bf16.mxu0 %v3292_v0 }
  0x62   :  { %3029 = vmatpush3.bf16.msra.mxu0 %v3587_v55 }
  0x63   :  { %3030 = vmatprep.subr.bf16.mxu0 %v3292_v0 }
  0x65   :  { %2581 = vmatmul.mubr.f32.vlgmr.msra.gmra.mrb[0].mxu0 %v3407_v42  ;;  %v37_v42 = vld [vmem:[%s3843_s4] sm:$0xf] }
  0x66   :  { %3032 = vmatpush3.bf16.msra.mxu0 %v3349_v12  ;;  %2615 = vmatprep.mubr.msk.f32.mxu0 %vm3293_vm0, %v3294_v4 }
  0x67   :  { %3033 = vmatprep.subr.bf16.mxu0 %v3292_v0 }
  0x6a   :  { %3035 = vmatpush3.bf16.msra.mxu0 %v3352_v13 }
  0x6b   :  { %3036 = vmatprep.subr.bf16.mxu0 %v3292_v0 }
  0x6e   :  { %3038 = vmatpush3.bf16.msra.mxu0 %v3362_v18 }
  0x6f   :  { %3039 = vmatprep.subr.bf16.mxu0 %v3292_v0 }
  0x72   :  { %3041 = vmatpush3.bf16.msra.mxu0 %v3398_v32 }
  0x73   :  { %3042 = vmatprep.subr.bf16.mxu0 %v3292_v0 }
  0x76   :  { %3044 = vmatpush3.bf16.msra.mxu0 %v3414_v45 }
  0x77   :  { %3045 = vmatprep.subr.bf16.mxu0 %v3292_v0 }
  0x7a   :  { %3047 = vmatpush3.bf16.msra.mxu0 %v3421_v49 }
  0x7b   :  { %3048 = vmatprep.subr.bf16.mxu0 %v3292_v0 }
  0x7e   :  { %3050 = vmatpush3.bf16.msra.mxu0 %v3423_v50 }
  0x7f   :  { %3051 = vmatprep.subr.bf16.mxu0 %v3292_v0 }
  0x82   :  { %3053 = vmatpush3.bf16.msra.mxu0 %v3425_v51 }
  0x83   :  { %3054 = vmatprep.subr.bf16.mxu0 %v3292_v0 }
  0x85   :  { %2616 = vmatmul.mubr.f32.vlgmr.msra.gmra.mrb[0].mxu0 %v121_v52  ;;  %v685_v52 = vsel %vm683_vm1, %v37_v42, 0 }
  0x86   :  { %3056 = vmatpush3.bf16.msra.mxu0 %v3475_v27  ;;  %2650 = vmatprep.mubr.msk.f32.mxu0 %vm3293_vm0, %v3294_v4  ;;  %v3656_v59 = vand.u32 4294901760, %v685_v52 }
  0x87   :  { %3057 = vmatprep.subr.bf16.mxu0 %v3292_v0 }
  0x88   :  { %2689 = vmatpush3.msra.mxu1 %v3656_v59 }
  0x89   :  { %2693 = vmatprep.subr.mxu1 %v3294_v4 }
  0x8a   :  { %3059 = vmatpush3.bf16.msra.mxu0 %v3477_v28 }
  0x8b   :  { %3060 = vmatprep.subr.bf16.mxu0 %v3292_v0 }
  0x8e   :  { %3062 = vmatpush3.bf16.msra.mxu0 %v3479_v29 }
  0x8f   :  { %3063 = vmatprep.subr.bf16.mxu0 %v3292_v0 }
  0x92   :  { %3065 = vmatpush3.bf16.msra.mxu0 %v3482_v30 }
  0x93   :  { %3066 = vmatprep.subr.bf16.mxu0 %v3292_v0 }
  0x96   :  { %3068 = vmatpush3.bf16.msra.mxu0 %v3484_v33 }
  0x97   :  { %3069 = vmatprep.subr.bf16.mxu0 %v3292_v0 }
  0x9a   :  { %3071 = vmatpush3.bf16.msra.mxu0 %v3486_v36 }
  0x9b   :  { %3072 = vmatprep.subr.bf16.mxu0 %v3292_v0 }
  0x9e   :  { %3074 = vmatpush3.bf16.msra.mxu0 %v3488_v37 }
  0x9f   :  { %3075 = vmatprep.subr.bf16.mxu0 %v3292_v0 }
  0xa2   :  { %3077 = vmatpush3.bf16.msra.mxu0 %v3491_v38 }
  0xa3   :  { %3078 = vmatprep.subr.bf16.mxu0 %v3292_v0 }
  0xa5   :  { %2651 = vmatmul.mubr.f32.vlgmr.msra.gmra.mrb[0].mxu0 %v3395_v31 }
  0xa6   :  { %3080 = vmatpush3.bf16.msra.mxu0 %v3349_v12  ;;  %2685 = vmatprep.mubr.msk.f32.mxu0 %vm3293_vm0, %v3294_v4 }
  0xa7   :  { %3081 = vmatprep.subr.bf16.mxu0 %v3292_v0 }
  0xaa   :  { %3083 = vmatpush3.bf16.msra.mxu0 %v3352_v13 }
  0xab   :  { %3084 = vmatprep.subr.bf16.mxu0 %v3292_v0 }
  0xae   :  { %3086 = vmatpush3.bf16.msra.mxu0 %v3362_v18 }
  0xaf   :  { %3087 = vmatprep.subr.bf16.mxu0 %v3292_v0 }
  0xb2   :  { %3089 = vmatpush3.bf16.msra.mxu0 %v3398_v32 }
  0xb3   :  { %3090 = vmatprep.subr.bf16.mxu0 %v3292_v0 }
  0xb6   :  { %3092 = vmatpush3.bf16.msra.mxu0 %v3414_v45 }
  0xb7   :  { %3093 = vmatprep.subr.bf16.mxu0 %v3292_v0 }
  0xba   :  { %3095 = vmatpush3.bf16.msra.mxu0 %v3421_v49 }
  0xbb   :  { %3096 = vmatprep.subr.bf16.mxu0 %v3292_v0 }
  0xbe   :  { %3098 = vmatpush3.bf16.msra.mxu0 %v3423_v50 }
  0xbf   :  { %3099 = vmatprep.subr.bf16.mxu0 %v3292_v0 }
  0xc2   :  { %3101 = vmatpush3.bf16.msra.mxu0 %v3425_v51 }
  0xc3   :  { %2928 = vmatprep.subr.mxu0 %v3294_v4 }
  0xc5   :  { %2686 = vmatmul.mubr.f32.vlgmr.msra.gmra.mrb[0].mxu0 %v3395_v31  ;;  %v3663_v31 = vsub.f32 %v685_v52, %v3656_v59 }
  0xc6   :  { %2930 = vmatprep.mubr.msk.f32.mxu0 %vm3293_vm0, %v3294_v4  ;;  %2929 = vmatpush3.msra.mxu0 %v3656_v59 }
  0xc7   :  { %2933 = vmatprep.subr.mxu0 %v3294_v4  ;;  %v3667_v63 = vand.u32 4294901760, %v3663_v31 }
  0xc9   :  { %v767_v3 = vsub.f32 %v3663_v31, %v3667_v63 }
  0xcb   :  { %v3671_v11 = vand.u32 4294901760, %v767_v3 }
 0x198   :  { %v675_v60 = vpop.f32.mrb[0].mxu0 }
 0x199   :  { %v681_v61 = vsel %vm679_vm2, %v675_v60, 0  ;;  %v2687_v62 = vpop.f32.mrb[1].mxu0 }
 0x19a   :  { %v753_v1 = vand.u32 4294901760, %v681_v61 }
 0x19c   :  { %v754_v2 = vsub.f32 %v681_v61, %v753_v1 }
 0x19e   :  { %v755_v5 = vand.u32 4294901760, %v754_v2 }
 0x1a0   :  { %v756_v9 = vsub.f32 %v754_v2, %v755_v5 }
 0x1a2   :  { %v757_v14 = vand.u32 4294901760, %v756_v9 }
 0x1a4   :  { %2691 = vmatmul.mubr.f32.vlgmr.msra.gmra.mrb[0].mxu1 %v757_v14 }
 0x1a5   :  { %2694 = vmatpush3.msra.mxu1 %v3671_v11  ;;  %2695 = vmatprep.mubr.msk.f32.mxu1 %vm3293_vm0, %v3294_v4 }
 0x1a6   :  { %2698 = vmatprep.subr.mxu1 %v3294_v4 }
 0x1ac   :  { %2696 = vmatmul.mubr.f32.vlgmr.msra.gmra.mrb[0].mxu1 %v753_v1 }
 0x1ad   :  { %2699 = vmatpush3.msra.mxu1 %v3663_v31  ;;  %2700 = vmatprep.mubr.msk.f32.mxu1 %vm3293_vm0, %v3294_v4 }
 0x1ae   :  { %2703 = vmatprep.subr.mxu1 %v3294_v4 }
 0x1b4   :  { %2701 = vmatmul.mubr.f32.vlgmr.msra.gmra.mrb[0].mxu1 %v754_v2 }
 0x1b5   :  { %2704 = vmatpush3.msra.mxu1 %v3656_v59  ;;  %2705 = vmatprep.mubr.msk.f32.mxu1 %vm3293_vm0, %v3294_v4 }
 0x1b6   :  { %2708 = vmatprep.subr.mxu1 %v3294_v4 }
 0x1bc   :  { %2706 = vmatmul.mubr.f32.vlgmr.msra.gmra.mrb[0].mxu1 %v755_v5 }
 0x1bd   :  { %2709 = vmatpush3.msra.mxu1 %v3667_v63  ;;  %2710 = vmatprep.mubr.msk.f32.mxu1 %vm3293_vm0, %v3294_v4 }
 0x1be   :  { %2713 = vmatprep.subr.mxu1 %v3294_v4 }
 0x1c4   :  { %2711 = vmatmul.mubr.f32.vlgmr.msra.gmra.mrb[0].mxu1 %v753_v1 }
 0x1c5   :  { %2714 = vmatpush3.msra.mxu1 %v3656_v59  ;;  %2715 = vmatprep.mubr.msk.f32.mxu1 %vm3293_vm0, %v3294_v4 }
 0x1c6   :  { %3102 = vmatprep.subr.bf16.mxu1 %v3292_v0 }
 0x1cc   :  { %2716 = vmatmul.mubr.f32.vlgmr.msra.gmra.mrb[0].mxu1 %v753_v1 }
 0x1cd   :  { %3104 = vmatpush3.bf16.msra.mxu1 %v3349_v12  ;;  %2750 = vmatprep.mubr.msk.f32.mxu1 %vm3293_vm0, %v3294_v4 }
 0x1ce   :  { %3105 = vmatprep.subr.bf16.mxu1 %v3292_v0 }
 0x1d1   :  { %3107 = vmatpush3.bf16.msra.mxu1 %v3352_v13 }
 0x1d2   :  { %3108 = vmatprep.subr.bf16.mxu1 %v3292_v0 }
 0x1d5   :  { %3110 = vmatpush3.bf16.msra.mxu1 %v3362_v18 }
 0x1d6   :  { %3111 = vmatprep.subr.bf16.mxu1 %v3292_v0 }
 0x1d9   :  { %3113 = vmatpush3.bf16.msra.mxu1 %v3398_v32 }
 0x1da   :  { %3114 = vmatprep.subr.bf16.mxu1 %v3292_v0 }
 0x1dd   :  { %3116 = vmatpush3.bf16.msra.mxu1 %v3414_v45 }
 0x1de   :  { %3117 = vmatprep.subr.bf16.mxu1 %v3292_v0 }
 0x1e1   :  { %3119 = vmatpush3.bf16.msra.mxu1 %v3421_v49 }
 0x1e2   :  { %3120 = vmatprep.subr.bf16.mxu1 %v3292_v0 }
 0x1e5   :  { %3122 = vmatpush3.bf16.msra.mxu1 %v3423_v50 }
 0x1e6   :  { %3123 = vmatprep.subr.bf16.mxu1 %v3292_v0 }
 0x1e9   :  { %3125 = vmatpush3.bf16.msra.mxu1 %v3425_v51 }
 0x1ea   :  { %3126 = vmatprep.subr.bf16.mxu1 %v3292_v0 }
 0x29f   :  { %v1129_v15 = vpop.f32.mrb[0].mxu1 }
 0x2a0   :  { %v3712_v39 = vsub.f32 %v3370_v22, %v1129_v15  ;;  %v2717_v40 = vpop.f32.mrb[1].mxu1 }
 0x2a2   :  { %v1134_v46 = vmul.f32 %v3712_v39, %v3712_v39 }
 0x2a4   :  { %v3716_v47 = vand.u32 4294901760, %v1134_v46 }
 0x2a6   :  { %v1217_v19 = vsub.f32 %v1134_v46, %v3716_v47 }
 0x2a8   :  { %v1218_v53 = vand.u32 4294901760, %v1217_v19 }
 0x2aa   :  { %v1219_v20 = vsub.f32 %v1217_v19, %v1218_v53 }
 0x2ac   :  { %v1220_v54 = vand.u32 4294901760, %v1219_v20 }
 0x2ae   :  { %2751 = vmatmul.mubr.f32.vlgmr.msra.gmra.mrb[2].mxu1 %v1220_v54 }
 0x2af   :  { %3128 = vmatpush3.bf16.msra.mxu1 %v3495_v41  ;;  %2785 = vmatprep.mubr.msk.f32.mxu1 %vm3293_vm0, %v3294_v4 }
 0x2b0   :  { %3129 = vmatprep.subr.bf16.mxu1 %v3292_v0 }
 0x2b3   :  { %3131 = vmatpush3.bf16.msra.mxu1 %v3501_v56 }
 0x2b4   :  { %3132 = vmatprep.subr.bf16.mxu1 %v3292_v0 }
 0x2b7   :  { %3134 = vmatpush3.bf16.msra.mxu1 %v3508_v8 }
 0x2b8   :  { %3135 = vmatprep.subr.bf16.mxu1 %v3292_v0 }
 0x2bb   :  { %3137 = vmatpush3.bf16.msra.mxu1 %v3515_v16 }
 0x2bc   :  { %3138 = vmatprep.subr.bf16.mxu1 %v3292_v0 }
 0x2bf   :  { %3140 = vmatpush3.bf16.msra.mxu1 %v3521_v17 }
 0x2c0   :  { %3141 = vmatprep.subr.bf16.mxu1 %v3292_v0 }
 0x2c3   :  { %3143 = vmatpush3.bf16.msra.mxu1 %v3527_v57 }
 0x2c4   :  { %3144 = vmatprep.subr.bf16.mxu1 %v3292_v0 }
 0x2c7   :  { %3146 = vmatpush3.bf16.msra.mxu1 %v3532_v58 }
 0x2c8   :  { %3147 = vmatprep.subr.bf16.mxu1 %v3292_v0 }
 0x2cb   :  { %3149 = vmatpush3.bf16.msra.mxu1 %v3536_v25 }
 0x2cc   :  { %3150 = vmatprep.subr.bf16.mxu1 %v3292_v0 }
 0x2ce   :  { %2786 = vmatmul.mubr.f32.vlgmr.msra.gmra.mrb[2].mxu1 %v3716_v47 }
 0x2cf   :  { %3152 = vmatpush3.bf16.msra.mxu1 %v3542_v26  ;;  %2820 = vmatprep.mubr.msk.f32.mxu1 %vm3293_vm0, %v3294_v4 }
 0x2d0   :  { %3153 = vmatprep.subr.bf16.mxu1 %v3292_v0 }
 0x2d3   :  { %3155 = vmatpush3.bf16.msra.mxu1 %v3549_v10 }
 0x2d4   :  { %3156 = vmatprep.subr.bf16.mxu1 %v3292_v0 }
 0x2d7   :  { %3158 = vmatpush3.bf16.msra.mxu1 %v3557_v34 }
 0x2d8   :  { %3159 = vmatprep.subr.bf16.mxu1 %v3292_v0 }
 0x2db   :  { %3161 = vmatpush3.bf16.msra.mxu1 %v3563_v35 }
 0x2dc   :  { %3162 = vmatprep.subr.bf16.mxu1 %v3292_v0 }
 0x2df   :  { %3164 = vmatpush3.bf16.msra.mxu1 %v3569_v43 }
 0x2e0   :  { %3165 = vmatprep.subr.bf16.mxu1 %v3292_v0 }
 0x2e3   :  { %3167 = vmatpush3.bf16.msra.mxu1 %v3575_v44 }
 0x2e4   :  { %3168 = vmatprep.subr.bf16.mxu1 %v3292_v0 }
 0x2e7   :  { %3170 = vmatpush3.bf16.msra.mxu1 %v3581_v48 }
 0x2e8   :  { %3171 = vmatprep.subr.bf16.mxu1 %v3292_v0 }
 0x2eb   :  { %3173 = vmatpush3.bf16.msra.mxu1 %v3587_v55 }
 0x2ec   :  { %3174 = vmatprep.subr.bf16.mxu1 %v3292_v0 }
 0x2ee   :  { %2821 = vmatmul.mubr.f32.vlgmr.msra.gmra.mrb[2].mxu1 %v1217_v19 }
 0x2ef   :  { %3176 = vmatpush3.bf16.msra.mxu1 %v3349_v12  ;;  %2855 = vmatprep.mubr.msk.f32.mxu1 %vm3293_vm0, %v3294_v4 }
 0x2f0   :  { %3177 = vmatprep.subr.bf16.mxu1 %v3292_v0 }
 0x2f3   :  { %3179 = vmatpush3.bf16.msra.mxu1 %v3352_v13 }
 0x2f4   :  { %3180 = vmatprep.subr.bf16.mxu1 %v3292_v0 }
 0x2f7   :  { %3182 = vmatpush3.bf16.msra.mxu1 %v3362_v18 }
 0x2f8   :  { %3183 = vmatprep.subr.bf16.mxu1 %v3292_v0 }
 0x2fb   :  { %3185 = vmatpush3.bf16.msra.mxu1 %v3398_v32 }
 0x2fc   :  { %3186 = vmatprep.subr.bf16.mxu1 %v3292_v0 }
 0x2ff   :  { %3188 = vmatpush3.bf16.msra.mxu1 %v3414_v45 }
 0x300   :  { %3189 = vmatprep.subr.bf16.mxu1 %v3292_v0 }
 0x303   :  { %3191 = vmatpush3.bf16.msra.mxu1 %v3421_v49 }
 0x304   :  { %3192 = vmatprep.subr.bf16.mxu1 %v3292_v0 }
 0x307   :  { %3194 = vmatpush3.bf16.msra.mxu1 %v3423_v50 }
 0x308   :  { %3195 = vmatprep.subr.bf16.mxu1 %v3292_v0 }
 0x30b   :  { %3197 = vmatpush3.bf16.msra.mxu1 %v3425_v51 }
 0x30c   :  { %3198 = vmatprep.subr.bf16.mxu1 %v3292_v0 }
 0x30e   :  { %2856 = vmatmul.mubr.f32.vlgmr.msra.gmra.mrb[2].mxu1 %v1218_v53 }
 0x30f   :  { %3200 = vmatpush3.bf16.msra.mxu1 %v3475_v27  ;;  %2890 = vmatprep.mubr.msk.f32.mxu1 %vm3293_vm0, %v3294_v4 }
 0x310   :  { %3201 = vmatprep.subr.bf16.mxu1 %v3292_v0 }
 0x313   :  { %3203 = vmatpush3.bf16.msra.mxu1 %v3477_v28 }
 0x314   :  { %3204 = vmatprep.subr.bf16.mxu1 %v3292_v0 }
 0x317   :  { %3206 = vmatpush3.bf16.msra.mxu1 %v3479_v29 }
 0x318   :  { %3207 = vmatprep.subr.bf16.mxu1 %v3292_v0 }
 0x31b   :  { %3209 = vmatpush3.bf16.msra.mxu1 %v3482_v30 }
 0x31c   :  { %3210 = vmatprep.subr.bf16.mxu1 %v3292_v0 }
 0x31f   :  { %3212 = vmatpush3.bf16.msra.mxu1 %v3484_v33  ;;  %v2249_v33 = vld [vmem:[%s3845_s2] ss:$0 sm:$0xff] }
 0x320   :  { %3213 = vmatprep.subr.bf16.mxu1 %v3292_v0 }
 0x323   :  { %3215 = vmatpush3.bf16.msra.mxu1 %v3486_v36 }
 0x324   :  { %3216 = vmatprep.subr.bf16.mxu1 %v3292_v0 }
 0x327   :  { %3218 = vmatpush3.bf16.msra.mxu1 %v3488_v37 }
 0x328   :  { %3219 = vmatprep.subr.bf16.mxu1 %v3292_v0 }
 0x32b   :  { %3221 = vmatpush3.bf16.msra.mxu1 %v3491_v38 }
 0x32c   :  { %3222 = vmatprep.subr.bf16.mxu1 %v3292_v0 }
 0x32e   :  { %2891 = vmatmul.mubr.f32.vlgmr.msra.gmra.mrb[2].mxu1 %v3716_v47 }
 0x32f   :  { %3224 = vmatpush3.bf16.msra.mxu1 %v3349_v12  ;;  %2925 = vmatprep.mubr.msk.f32.mxu1 %vm3293_vm0, %v3294_v4 }
 0x330   :  { %3225 = vmatprep.subr.bf16.mxu1 %v3292_v0 }
 0x333   :  { %3227 = vmatpush3.bf16.msra.mxu1 %v3352_v13 }
 0x334   :  { %3228 = vmatprep.subr.bf16.mxu1 %v3292_v0 }
 0x337   :  { %3230 = vmatpush3.bf16.msra.mxu1 %v3362_v18 }
 0x338   :  { %3231 = vmatprep.subr.bf16.mxu1 %v3292_v0 }
 0x33b   :  { %3233 = vmatpush3.bf16.msra.mxu1 %v3398_v32 }
 0x33c   :  { %3234 = vmatprep.subr.bf16.mxu1 %v3292_v0 }
 0x33f   :  { %3236 = vmatpush3.bf16.msra.mxu1 %v3414_v45 }
 0x340   :  { %3237 = vmatprep.subr.bf16.mxu1 %v3292_v0 }
 0x343   :  { %3239 = vmatpush3.bf16.msra.mxu1 %v3421_v49 }
 0x344   :  { %3240 = vmatprep.subr.bf16.mxu1 %v3292_v0 }
 0x347   :  { %3242 = vmatpush3.bf16.msra.mxu1 %v3423_v50  ;;  %v2248_v50 = vld [vmem:[%s3844_s1] ss:$0 sm:$0xff] }
 0x348   :  { %3243 = vmatprep.subr.bf16.mxu1 %v3292_v0 }
 0x34b   :  { %3245 = vmatpush3.bf16.msra.mxu1 %v3425_v51 }
 0x34e   :  { %2926 = vmatmul.mubr.f32.vlgmr.msra.gmra.mrb[2].mxu1 %v3716_v47 }
 0x421   :  { %v1772_v12 = vpop.f32.mrb[2].mxu1 }
 0x422   :  { %v3246_v13 = vadd.f32 1e-05, %v1772_v12  ;;  %v2927_v18 = vpop.f32.mrb[3].mxu1 }
 0x424   :  { %3290 = vrsqrt.f32 %v3246_v13 }
 0x42e   :  { %v3291_v22 = vpop.eup %3290 }
 0x42f   :  { %v1778_v32 = vsel %vm679_vm2, %v3291_v22, 0 }
 0x430   :  { %v1846_v45 = vand.u32 4294901760, %v1778_v32 }
 0x432   :  { %v1847_v27 = vsub.f32 %v1778_v32, %v1846_v45 }
 0x434   :  { %v1848_v49 = vand.u32 4294901760, %v1847_v27 }
 0x436   :  { %v1849_v28 = vsub.f32 %v1847_v27, %v1848_v49 }
 0x438   :  { %v1850_v29 = vand.u32 4294901760, %v1849_v28 }
 0x43a   :  { %2931 = vmatmul.mubr.f32.vlgmr.msra.gmra.mrb[2].mxu0 %v1850_v29 }
 0x43b   :  { %2934 = vmatpush3.msra.mxu0 %v3671_v11  ;;  %2935 = vmatprep.mubr.msk.f32.mxu0 %vm3293_vm0, %v3294_v4 }
 0x43c   :  { %2938 = vmatprep.subr.mxu0 %v3294_v4 }
 0x442   :  { %2936 = vmatmul.mubr.f32.vlgmr.msra.gmra.mrb[2].mxu0 %v1846_v45 }
 0x443   :  { %2939 = vmatpush3.msra.mxu0 %v3663_v31  ;;  %2940 = vmatprep.mubr.msk.f32.mxu0 %vm3293_vm0, %v3294_v4 }
 0x444   :  { %2943 = vmatprep.subr.mxu0 %v3294_v4 }
 0x44a   :  { %2941 = vmatmul.mubr.f32.vlgmr.msra.gmra.mrb[2].mxu0 %v1847_v27 }
 0x44b   :  { %2944 = vmatpush3.msra.mxu0 %v3656_v59  ;;  %2945 = vmatprep.mubr.msk.f32.mxu0 %vm3293_vm0, %v3294_v4 }
 0x44c   :  { %2948 = vmatprep.subr.mxu0 %v3294_v4 }
 0x452   :  { %2946 = vmatmul.mubr.f32.vlgmr.msra.gmra.mrb[2].mxu0 %v1848_v49 }
 0x453   :  { %2949 = vmatpush3.msra.mxu0 %v3667_v63  ;;  %2950 = vmatprep.mubr.msk.f32.mxu0 %vm3293_vm0, %v3294_v4 }
 0x454   :  { %2953 = vmatprep.subr.mxu0 %v3294_v4 }
 0x45a   :  { %2951 = vmatmul.mubr.f32.vlgmr.msra.gmra.mrb[2].mxu0 %v1846_v45 }
 0x45b   :  { %2954 = vmatpush3.msra.mxu0 %v3656_v59  ;;  %2955 = vmatprep.mubr.msk.f32.mxu0 %vm3293_vm0, %v3294_v4 }
 0x462   :  { %2956 = vmatmul.mubr.f32.vlgmr.msra.gmra.mrb[2].mxu0 %v1846_v45 }
 0x535   :  { %v2222_v0 = vpop.f32.mrb[2].mxu0 }
 0x536   :  { %v2226_v51 = vmul.f32 %v2222_v0, %v3712_v39  ;;  %v2957_v30 = vpop.f32.mrb[3].mxu0 }
 0x538   :  { %v2234_v36 = vmul.f32 %v2248_v50, %v2226_v51 }
 0x53a   :  { %v2242_v37 = vadd.f32 %v2249_v33, %v2234_v36 }
 0x53c   :  { %2243 = vst [vmem:[%s3846_s5] sm:$0xf] %v2242_v37 }

</bundles_post_ra>
